<compile_context>
chip_gen: v6e
topology: v6e:2x2x1
jax: 0.10.0
libtpu: 0.0.40
codegen_flags: <defaults>
</compile_context>

<pallas_src>
import functools

import jax
import jax.numpy as jnp
from jax.experimental import pallas as pl
from jax.experimental.pallas import tpu as pltpu

EPS = 1e-5


def _vgg_block2_kernel(seq_len, x_hbm, w_ref, gb_ref, o_ref, x_vmem, stk_ref, sems):
    """x_hbm: (n_seg, C_in, seg_len) f32 in HBM (n_seg*seg_len == N*L).
    w_ref: (4, C_out, 3*C_max) bf16 packed conv weights (tap-major, layer-1
    zero-padded along channels).  gb_ref: (C_out, 8) f32 with columns
    [gamma1, beta1, ..., gamma4, beta4].  o_ref: (C_out, N*L) f32.
    x_vmem: (C_in, N*L) f32 scratch.  stk_ref: (3*C_max, N*L) bf16 scratch."""
    n_seg, c_in, seg_len = x_hbm.shape
    c_out, nl = o_ref.shape
    c_max = stk_ref.shape[0] // 3
    inv_nl = 1.0 / float(nl)

    # In-kernel NCL -> (C, N*L) transpose: each batch's contiguous (C, L) HBM
    # slab lands at lane offset s*L of the VMEM slab (no wrapper-side XLA
    # transpose pass over HBM).  Offsets are lane-aligned by construction.
    copies = [
        pltpu.make_async_copy(
            x_hbm.at[s], x_vmem.at[:, pl.ds(s * seg_len, seg_len)], sems.at[s])
        for s in range(n_seg)
    ]
    for c in copies:
        c.start()

    # Boundary masks for the shifted taps, materialized ONCE at full channel
    # height (no per-use sublane broadcast).  0/1 f32 masks + multiply
    # (portable to v5e's f32-only VALU; matmul operands are still bf16).
    pos = jax.lax.broadcasted_iota(jnp.int32, (c_max, nl), 1) % seq_len
    mask_first = (pos != 0).astype(jnp.float32)           # zero where l == 0
    mask_last = (pos != seq_len - 1).astype(jnp.float32)  # zero where l == L-1

    if c_in < c_max:
        # Layer 1 writes only c_in of the c_max rows per tap block; zero the
        # scratch once so the zero-padded weight columns never multiply
        # uninitialized bf16 bits (0 * NaN risk).
        stk_ref[...] = jnp.zeros_like(stk_ref)

    def layer(x, idx):
        ci = x.shape[0]
        gamma = gb_ref[:, 2 * idx:2 * idx + 1]       # (C_out, 1)
        beta = gb_ref[:, 2 * idx + 1:2 * idx + 2]    # (C_out, 1)
        mf = mask_first if ci == c_max else mask_first[:ci]
        ml = mask_last if ci == c_max else mask_last[:ci]

        # x[l-1] / x[l+1] with zero padding at each length-L segment boundary.
        # Cast to bf16 BEFORE stacking: taps go straight into the persistent
        # bf16 scratch (no f32 concat intermediate, half the store traffic).
        stk_ref[pl.ds(0, ci), :] = (pltpu.roll(x, 1, 1) * mf).astype(jnp.bfloat16)
        stk_ref[pl.ds(c_max, ci), :] = x.astype(jnp.bfloat16)
        stk_ref[pl.ds(2 * c_max, ci), :] = (pltpu.roll(x, nl - 1, 1) * ml).astype(jnp.bfloat16)

        # Fused 3-tap conv: ONE MXU matmul over a 3*C_max contraction
        # (bf16 in, f32 accumulate).  Zero-padded columns contribute nothing.
        y = jnp.dot(w_ref[idx], stk_ref[...], preferred_element_type=jnp.float32)

        # MixtureNorm1d ~ BatchNorm1d with batch statistics, one-pass
        # (sum, sumsq).  Conv bias is omitted: it cancels exactly against the
        # batch mean.  Norm folded into one scale/shift -> 2 VPU ops/element.
        mean = jnp.sum(y, axis=1, keepdims=True) * inv_nl
        var = jnp.sum(y * y, axis=1, keepdims=True) * inv_nl - mean * mean
        scale = gamma * jax.lax.rsqrt(jnp.maximum(var, 0.0) + EPS)
        shift = beta - mean * scale
        return jnp.maximum(y * scale + shift, 0.0)

    for c in copies:
        c.wait()

    y = layer(x_vmem[...], 0)
    y = layer(y, 1)
    y = layer(y, 2)
    y = layer(y, 3)
    o_ref[...] = y


def _vmem_limit_bytes(resident_bytes, temp_bytes):
    """Chip-aware VMEM budget: ~85% of physical (v7x: ~54 MiB, v5e/v6e: ~108 MiB)."""
    try:
        cap = int(pltpu.get_tpu_info().vmem_capacity_bytes)
    except Exception:  # conservative fallback (safe on every chip)
        cap = 64 * 2**20
    cap = (cap * 85) // 100
    want = 2 * (resident_bytes + temp_bytes)
    return int(min(cap, max(32 * 2**20, want)))


def vgg_block2_forward(x, params, data_type="normal"):
    n, c_in, seq_len = x.shape
    c_out = params["conv1"]["w"].shape[0]
    c_max = max(c_in, c_out)
    nl = n * seq_len

    # Input for the in-kernel transpose fusion: if L is lane-aligned, hand the
    # kernel the raw NCL tensor (one DMA per batch into lane offset n*L);
    # otherwise fall back to a wrapper-side transpose packed as one segment.
    if seq_len % 128 == 0:
        x_in = x.astype(jnp.float32)                                   # (N, C, L)
    else:
        x_in = jnp.transpose(x, (1, 0, 2)).reshape(1, c_in, nl).astype(jnp.float32)
    n_seg = x_in.shape[0]

    # Pack the 4 conv weights into ONE bf16 slab (4, C_out, 3*C_max), tap-major
    # to match the [x_prev; x; x_next] sublane stacking, layer-1 zero-padded
    # along channels.  Pack gamma/beta for all 4 layers into one (C_out, 8).
    ws, gb_cols = [], []
    for i in range(1, 5):
        w = params[f"conv{i}"]["w"]                                    # (C_out, C_in_i, 3)
        ci = w.shape[1]
        wt = jnp.transpose(w, (0, 2, 1))                               # (C_out, 3, C_in_i)
        wt = jnp.pad(wt, ((0, 0), (0, 0), (0, c_max - ci)))
        ws.append(wt.reshape(c_out, 3 * c_max))
        norm = params[f"norm{i}"][data_type]
        gb_cols.append(norm["gamma"])
        gb_cols.append(norm["beta"])
    w_all = jnp.stack(ws, axis=0).astype(jnp.bfloat16)                 # (4, C_out, 3*C_max)
    gb = jnp.stack(gb_cols, axis=1).astype(jnp.float32)                # (C_out, 8)

    resident = (c_in * nl * 4                    # x slab (f32 scratch)
                + 3 * c_max * nl * 2             # stacked bf16 scratch
                + c_out * nl * 4                 # output tile
                + 2 * int(w_all.size) + 4 * int(gb.size))
    temps = 8 * c_max * nl * 4                   # per-layer f32 temporaries
    vmem_limit = _vmem_limit_bytes(resident, temps)

    out = pl.pallas_call(
        functools.partial(_vgg_block2_kernel, seq_len),
        out_shape=jax.ShapeDtypeStruct((c_out, nl), jnp.float32),
        in_specs=[
            pl.BlockSpec(memory_space=pl.ANY),                          # x: raw HBM, manual DMA
            pl.BlockSpec(memory_space=pltpu.MemorySpace.VMEM),          # packed conv weights
            pl.BlockSpec(memory_space=pltpu.MemorySpace.VMEM),          # packed gamma/beta
        ],
        out_specs=pl.BlockSpec(memory_space=pltpu.MemorySpace.VMEM),
        scratch_shapes=[
            pltpu.VMEM((c_in, nl), jnp.float32),        # (C, N*L) activation slab
            pltpu.VMEM((3 * c_max, nl), jnp.bfloat16),  # persistent stacked-tap buffer
            pltpu.SemaphoreType.DMA((n_seg,)),
        ],
        compiler_params=pltpu.CompilerParams(vmem_limit_bytes=vmem_limit),
    )(x_in, w_all, gb)

    # MaxPool1d(2) in the wrapper: O(C*NL) reshape+max (matches PyTorch's
    # truncation of odd lengths).
    l_out = seq_len // 2
    y = out.reshape(c_out, n, seq_len)[:, :, : 2 * l_out]
    y = jnp.max(y.reshape(c_out, n, l_out, 2), axis=-1)
    return jnp.transpose(y, (1, 0, 2))                                  # (N, C_out, L//2)


def init_params(key, c_in, c_out, data_types):
    params = {}
    chans = [c_in, c_out, c_out, c_out]
    for i in range(1, 5):
        ci = chans[i - 1]
        key, kw, kb = jax.random.split(key, 3)
        bound = 1.0 / float(jnp.sqrt(ci * 3.0))
        params[f"conv{i}"] = {
            "w": jax.random.uniform(kw, (c_out, ci, 3), jnp.float32, -bound, bound),
            "b": jax.random.uniform(kb, (c_out,), jnp.float32, -bound, bound),
        }
        norm = {}
        for dt in data_types:
            key, kg, kbeta = jax.random.split(key, 3)
            norm[dt] = {
                "gamma": 1.0 + 0.1 * jax.random.normal(kg, (c_out,), jnp.float32),
                "beta": 0.1 * jax.random.normal(kbeta, (c_out,), jnp.float32),
            }
        params[f"norm{i}"] = norm
    return params


def reference_forward(x, params, data_type="normal"):
    """Pure-JAX reference with PyTorch forward semantics (conv bias included,
    two-pass batch statistics).  Conv operands are cast to bf16 with f32
    accumulation to mirror the kernel's MXU input precision."""
    y = x.astype(jnp.float32)
    for i in range(1, 5):
        w = params[f"conv{i}"]["w"]
        b = params[f"conv{i}"]["b"]
        y = jax.lax.conv_general_dilated(
            y.astype(jnp.bfloat16), w.astype(jnp.bfloat16),
            window_strides=(1,), padding=[(1, 1)],
            dimension_numbers=("NCH", "OIH", "NCH"),
            preferred_element_type=jnp.float32)
        y = y + b[None, :, None]
        g = params[f"norm{i}"][data_type]["gamma"]
        be = params[f"norm{i}"][data_type]["beta"]
        mean = jnp.mean(y, axis=(0, 2), keepdims=True)
        var = jnp.mean(jnp.square(y - mean), axis=(0, 2), keepdims=True)
        y = g[None, :, None] * (y - mean) / jnp.sqrt(var + EPS) + be[None, :, None]
        y = jnp.maximum(y, 0.0)
    n, c, l = y.shape
    return jnp.max(y[:, :, : (l // 2) * 2].reshape(n, c, l // 2, 2), axis=-1)


if __name__ == "__main__":
    key = jax.random.PRNGKey(0)
    kx, kp = jax.random.split(key)

    # Small demo shapes, lane-aligned so the in-kernel DMA transpose path is
    # exercised: channels multiples of 8, L = 128 (N*L = 256 lane-dense).
    N, C_IN, C_OUT, L = 2, 8, 16, 128
    data_types = ("normal", "anomaly")

    x = jax.random.normal(kx, (N, C_IN, L), jnp.float32)
    params = init_params(kp, C_IN, C_OUT, data_types)

    out = vgg_block2_forward(x, params, data_type="normal")
    out = jax.block_until_ready(out)

    ref = reference_forward(x, params, data_type="normal")
    assert out.shape == (N, C_OUT, L // 2), out.shape
    # Tolerance absorbs bf16 rounding-order differences (kernel single fused
    # matmul vs. lax.conv) amplified through 4 batch-norm layers.
    max_err = float(jnp.max(jnp.abs(out - ref)))
    assert jnp.allclose(out, ref, rtol=1e-2, atol=2e-2), max_err
    print("KERNEL_OK")
</pallas_src>

<mosaic_0001>
module attributes {stable_mosaic.version = 11 : i64} {
  func.func @_vgg_block2_kernel(%arg0: memref<2x8x128xf32, #tpu.memory_space<any>>, %arg1: memref<4x16x48xbf16, #tpu.memory_space<vmem>>, %arg2: memref<16x8xf32, #tpu.memory_space<vmem>>, %arg3: memref<16x256xf32, #tpu.memory_space<vmem>>, %arg4: memref<8x256xf32, #tpu.memory_space<vmem>>, %arg5: memref<48x256xbf16, #tpu.memory_space<vmem>>, %arg6: memref<2x!tpu.dma_semaphore, #tpu.memory_space<semaphore_mem>>) attributes {dimension_semantics = [], scalar_prefetch = 0 : i64, scratch_operands = 3 : i64, tpu.core_type = #tpu.core_type<tc>} {
    %c0_i32 = arith.constant 0 : i32
    %c0_i32_0 = arith.constant 0 : i32
    %c0_i32_1 = arith.constant 0 : i32
    %c0_i32_2 = arith.constant 0 : i32
    %0 = tpu.memref_slice %arg0[%c0_i32, %c0_i32_1, %c0_i32_2] : memref<2x8x128xf32, #tpu.memory_space<any>> -> memref<1x8x128xf32, #tpu.memory_space<any>>
    %1 = tpu.memref_squeeze %0 : memref<1x8x128xf32, #tpu.memory_space<any>> -> memref<8x128xf32, #tpu.memory_space<any>>
    %c0_i32_3 = arith.constant 0 : i32
    %c0_i32_4 = arith.constant 0 : i32
    %2 = tpu.memref_slice %arg4[%c0_i32_3, %c0_i32_4] : memref<8x256xf32, #tpu.memory_space<vmem>> -> memref<8x128xf32, #tpu.memory_space<vmem>>
    %3 = tpu.memref_slice %arg6[%c0_i32_0] : memref<2x!tpu.dma_semaphore, #tpu.memory_space<semaphore_mem>> -> memref<1x!tpu.dma_semaphore, #tpu.memory_space<semaphore_mem>>
    %4 = tpu.memref_squeeze %3 : memref<1x!tpu.dma_semaphore, #tpu.memory_space<semaphore_mem>> -> memref<!tpu.dma_semaphore, #tpu.memory_space<semaphore_mem>>
    tpu.enqueue_dma source(%1 : memref<8x128xf32, #tpu.memory_space<any>>) target(%2 : memref<8x128xf32, #tpu.memory_space<vmem>>) target_semaphore(%4 : memref<!tpu.dma_semaphore, #tpu.memory_space<semaphore_mem>>)
    %c1_i32 = arith.constant 1 : i32
    %c1_i32_5 = arith.constant 1 : i32
    %c0_i32_6 = arith.constant 0 : i32
    %c0_i32_7 = arith.constant 0 : i32
    %5 = tpu.memref_slice %arg0[%c1_i32, %c0_i32_6, %c0_i32_7] : memref<2x8x128xf32, #tpu.memory_space<any>> -> memref<1x8x128xf32, #tpu.memory_space<any>>
    %6 = tpu.memref_squeeze %5 : memref<1x8x128xf32, #tpu.memory_space<any>> -> memref<8x128xf32, #tpu.memory_space<any>>
    %c0_i32_8 = arith.constant 0 : i32
    %c128_i32 = arith.constant 128 : i32
    %7 = tpu.memref_slice %arg4[%c0_i32_8, %c128_i32] : memref<8x256xf32, #tpu.memory_space<vmem>> -> memref<8x128xf32, #tpu.memory_space<vmem>>
    %8 = tpu.memref_slice %arg6[%c1_i32_5] : memref<2x!tpu.dma_semaphore, #tpu.memory_space<semaphore_mem>> -> memref<1x!tpu.dma_semaphore, #tpu.memory_space<semaphore_mem>>
    %9 = tpu.memref_squeeze %8 : memref<1x!tpu.dma_semaphore, #tpu.memory_space<semaphore_mem>> -> memref<!tpu.dma_semaphore, #tpu.memory_space<semaphore_mem>>
    tpu.enqueue_dma source(%6 : memref<8x128xf32, #tpu.memory_space<any>>) target(%7 : memref<8x128xf32, #tpu.memory_space<vmem>>) target_semaphore(%9 : memref<!tpu.dma_semaphore, #tpu.memory_space<semaphore_mem>>)
    %10 = tpu.iota {dimensions = array<i32: 1>} : vector<16x256xi32>
    %c128_i32_9 = arith.constant 128 : i32
    %c0_i32_10 = arith.constant 0 : i32
    %11 = arith.cmpi eq, %c128_i32_9, %c0_i32_10 : i32
    %c1_i32_11 = arith.constant 1 : i32
    %12 = arith.select %11, %c1_i32_11, %c128_i32_9 : i32
    %13 = vector.broadcast %12 : i32 to vector<16x256xi32>
    %14 = arith.remsi %10, %13 : vector<16x256xi32>
    %c0_i32_12 = arith.constant 0 : i32
    %15 = vector.broadcast %c0_i32_12 : i32 to vector<16x256xi32>
    %16 = arith.cmpi ne, %14, %15 : vector<16x256xi32>
    %c0_i32_13 = arith.constant 0 : i32
    %17 = vector.broadcast %c0_i32_13 : i32 to vector<16x256xi32>
    %18 = arith.cmpi slt, %14, %17 : vector<16x256xi32>
    %c0_i32_14 = arith.constant 0 : i32
    %19 = arith.cmpi slt, %12, %c0_i32_14 : i32
    %20 = vector.broadcast %19 : i1 to vector<16x256xi1>
    %21 = vector.broadcast %20 : vector<16x256xi1> to vector<16x256xi1>
    %22 = arith.xori %18, %21 : vector<16x256xi1>
    %23 = arith.andi %22, %16 : vector<16x256xi1>
    %24 = vector.broadcast %12 : i32 to vector<16x256xi32>
    %25 = arith.addi %14, %24 : vector<16x256xi32>
    %26 = arith.select %23, %25, %14 : vector<16x256xi1>, vector<16x256xi32>
    %c0_i32_15 = arith.constant 0 : i32
    %27 = vector.broadcast %c0_i32_15 : i32 to vector<16x256xi32>
    %28 = arith.cmpi ne, %26, %27 : vector<16x256xi32>
    %29 = arith.extui %28 : vector<16x256xi1> to vector<16x256xi32>
    %30 = arith.sitofp %29 : vector<16x256xi32> to vector<16x256xf32>
    %c127_i32 = arith.constant 127 : i32
    %31 = vector.broadcast %c127_i32 : i32 to vector<16x256xi32>
    %32 = arith.cmpi ne, %26, %31 : vector<16x256xi32>
    %33 = arith.extui %32 : vector<16x256xi1> to vector<16x256xi32>
    %34 = arith.sitofp %33 : vector<16x256xi32> to vector<16x256xf32>
    %cst = arith.constant 0.000000e+00 : bf16
    %35 = vector.broadcast %cst : bf16 to vector<48x256xbf16>
    %c0 = arith.constant 0 : index
    %c0_16 = arith.constant 0 : index
    %36 = vector.load %arg5[%c0, %c0_16] : memref<48x256xbf16, #tpu.memory_space<vmem>>, vector<48x256xbf16>
    tpu.vector_store %arg5[%c0, %c0_16], %35 {strides = array<i32>} : memref<48x256xbf16, #tpu.memory_space<vmem>>, vector<48x256xbf16>,
    %c0_i32_17 = arith.constant 0 : i32
    %c0_i32_18 = arith.constant 0 : i32
    %c0_i32_19 = arith.constant 0 : i32
    %c0_i32_20 = arith.constant 0 : i32
    %37 = tpu.memref_slice %arg0[%c0_i32_17, %c0_i32_19, %c0_i32_20] : memref<2x8x128xf32, #tpu.memory_space<any>> -> memref<1x8x128xf32, #tpu.memory_space<any>>
    %38 = tpu.memref_squeeze %37 : memref<1x8x128xf32, #tpu.memory_space<any>> -> memref<8x128xf32, #tpu.memory_space<any>>
    %c0_i32_21 = arith.constant 0 : i32
    %c0_i32_22 = arith.constant 0 : i32
    %39 = tpu.memref_slice %arg4[%c0_i32_21, %c0_i32_22] : memref<8x256xf32, #tpu.memory_space<vmem>> -> memref<8x128xf32, #tpu.memory_space<vmem>>
    %40 = tpu.memref_slice %arg6[%c0_i32_18] : memref<2x!tpu.dma_semaphore, #tpu.memory_space<semaphore_mem>> -> memref<1x!tpu.dma_semaphore, #tpu.memory_space<semaphore_mem>>
    %41 = tpu.memref_squeeze %40 : memref<1x!tpu.dma_semaphore, #tpu.memory_space<semaphore_mem>> -> memref<!tpu.dma_semaphore, #tpu.memory_space<semaphore_mem>>
    tpu.wait_dma2 semaphore(%41 : memref<!tpu.dma_semaphore, #tpu.memory_space<semaphore_mem>>) src(%38 : memref<8x128xf32, #tpu.memory_space<any>>) dst(%39 : memref<8x128xf32, #tpu.memory_space<vmem>>)
    %c1_i32_23 = arith.constant 1 : i32
    %c1_i32_24 = arith.constant 1 : i32
    %c0_i32_25 = arith.constant 0 : i32
    %c0_i32_26 = arith.constant 0 : i32
    %42 = tpu.memref_slice %arg0[%c1_i32_23, %c0_i32_25, %c0_i32_26] : memref<2x8x128xf32, #tpu.memory_space<any>> -> memref<1x8x128xf32, #tpu.memory_space<any>>
    %43 = tpu.memref_squeeze %42 : memref<1x8x128xf32, #tpu.memory_space<any>> -> memref<8x128xf32, #tpu.memory_space<any>>
    %c0_i32_27 = arith.constant 0 : i32
    %c128_i32_28 = arith.constant 128 : i32
    %44 = tpu.memref_slice %arg4[%c0_i32_27, %c128_i32_28] : memref<8x256xf32, #tpu.memory_space<vmem>> -> memref<8x128xf32, #tpu.memory_space<vmem>>
    %45 = tpu.memref_slice %arg6[%c1_i32_24] : memref<2x!tpu.dma_semaphore, #tpu.memory_space<semaphore_mem>> -> memref<1x!tpu.dma_semaphore, #tpu.memory_space<semaphore_mem>>
    %46 = tpu.memref_squeeze %45 : memref<1x!tpu.dma_semaphore, #tpu.memory_space<semaphore_mem>> -> memref<!tpu.dma_semaphore, #tpu.memory_space<semaphore_mem>>
    tpu.wait_dma2 semaphore(%46 : memref<!tpu.dma_semaphore, #tpu.memory_space<semaphore_mem>>) src(%43 : memref<8x128xf32, #tpu.memory_space<any>>) dst(%44 : memref<8x128xf32, #tpu.memory_space<vmem>>)
    %c0_29 = arith.constant 0 : index
    %c0_30 = arith.constant 0 : index
    %47 = vector.load %arg4[%c0_29, %c0_30] : memref<8x256xf32, #tpu.memory_space<vmem>>, vector<8x256xf32>
    %c0_31 = arith.constant 0 : index
    %c0_32 = arith.constant 0 : index
    %48 = vector.load %arg2[%c0_31, %c0_32] : memref<16x8xf32, #tpu.memory_space<vmem>>, vector<16x1xf32>
    %c0_33 = arith.constant 0 : index
    %c1 = arith.constant 1 : index
    %49 = vector.load %arg2[%c0_33, %c1] : memref<16x8xf32, #tpu.memory_space<vmem>>, vector<16x1xf32>
    %50 = vector.extract_strided_slice %30 {offsets = [0, 0], sizes = [8, 256], strides = [1, 1]} : vector<16x256xf32> to vector<8x256xf32>
    %51 = vector.extract_strided_slice %34 {offsets = [0, 0], sizes = [8, 256], strides = [1, 1]} : vector<16x256xf32> to vector<8x256xf32>
    %c1_i32_34 = arith.constant 1 : i32
    %52 = tpu.dynamic_rotate %47 by %c1_i32_34 dim 1 : vector<8x256xf32>, i32 -> vector<8x256xf32>
    %53 = arith.mulf %52, %50 : vector<8x256xf32>
    %54 = arith.truncf %53 : vector<8x256xf32> to vector<8x256xbf16>
    %c0_35 = arith.constant 0 : index
    %c0_36 = arith.constant 0 : index
    %55 = vector.load %arg5[%c0_35, %c0_36] : memref<48x256xbf16, #tpu.memory_space<vmem>>, vector<8x256xbf16>
    tpu.vector_store %arg5[%c0_35, %c0_36], %54 {strides = array<i32>} : memref<48x256xbf16, #tpu.memory_space<vmem>>, vector<8x256xbf16>,
    %56 = arith.truncf %47 : vector<8x256xf32> to vector<8x256xbf16>
    %c16 = arith.constant 16 : index
    %c0_37 = arith.constant 0 : index
    %57 = vector.load %arg5[%c16, %c0_37] : memref<48x256xbf16, #tpu.memory_space<vmem>>, vector<8x256xbf16>
    tpu.vector_store %arg5[%c16, %c0_37], %56 {strides = array<i32>} : memref<48x256xbf16, #tpu.memory_space<vmem>>, vector<8x256xbf16>,
    %c255_i32 = arith.constant 255 : i32
    %58 = tpu.dynamic_rotate %47 by %c255_i32 dim 1 : vector<8x256xf32>, i32 -> vector<8x256xf32>
    %59 = arith.mulf %58, %51 : vector<8x256xf32>
    %60 = arith.truncf %59 : vector<8x256xf32> to vector<8x256xbf16>
    %c32 = arith.constant 32 : index
    %c0_38 = arith.constant 0 : index
    %61 = vector.load %arg5[%c32, %c0_38] : memref<48x256xbf16, #tpu.memory_space<vmem>>, vector<8x256xbf16>
    tpu.vector_store %arg5[%c32, %c0_38], %60 {strides = array<i32>} : memref<48x256xbf16, #tpu.memory_space<vmem>>, vector<8x256xbf16>,
    %c0_39 = arith.constant 0 : index
    %c0_40 = arith.constant 0 : index
    %c0_41 = arith.constant 0 : index
    %62 = vector.load %arg1[%c0_39, %c0_40, %c0_41] : memref<4x16x48xbf16, #tpu.memory_space<vmem>>, vector<1x16x48xbf16>
    %63 = vector.shape_cast %62 : vector<1x16x48xbf16> to vector<16x48xbf16>
    %c0_42 = arith.constant 0 : index
    %c0_43 = arith.constant 0 : index
    %64 = vector.load %arg5[%c0_42, %c0_43] : memref<48x256xbf16, #tpu.memory_space<vmem>>, vector<48x256xbf16>
    %cst_44 = arith.constant dense<0.000000e+00> : vector<16x256xf32>
    %65 = tpu.matmul %63, %64, %cst_44 {dimension_numbers = #tpu.dot_dimension_numbers<[1], [0], [0], [1], [0, 0, 1, 1], [], []>} : vector<16x48xbf16>, vector<48x256xbf16>, vector<16x256xf32> -> vector<16x256xf32>
    %cst_45 = arith.constant dense<0.000000e+00> : vector<16xf32>
    %66 = vector.multi_reduction <add>, %65, %cst_45 [1] : vector<16x256xf32> to vector<16xf32>
    %67 = vector.shape_cast %66 : vector<16xf32> to vector<16x1xf32>
    %cst_46 = arith.constant 3.906250e-03 : f32
    %68 = vector.broadcast %cst_46 : f32 to vector<16x1xf32>
    %69 = arith.mulf %67, %68 : vector<16x1xf32>
    %70 = arith.mulf %65, %65 : vector<16x256xf32>
    %cst_47 = arith.constant dense<0.000000e+00> : vector<16xf32>
    %71 = vector.multi_reduction <add>, %70, %cst_47 [1] : vector<16x256xf32> to vector<16xf32>
    %72 = vector.shape_cast %71 : vector<16xf32> to vector<16x1xf32>
    %cst_48 = arith.constant 3.906250e-03 : f32
    %73 = vector.broadcast %cst_48 : f32 to vector<16x1xf32>
    %74 = arith.mulf %72, %73 : vector<16x1xf32>
    %75 = arith.mulf %69, %69 : vector<16x1xf32>
    %76 = arith.subf %74, %75 : vector<16x1xf32>
    %cst_49 = arith.constant 0.000000e+00 : f32
    %77 = vector.broadcast %cst_49 : f32 to vector<16x1xf32>
    %78 = arith.maximumf %76, %77 : vector<16x1xf32>
    %cst_50 = arith.constant 9.99999974E-6 : f32
    %79 = vector.broadcast %cst_50 : f32 to vector<16x1xf32>
    %80 = arith.addf %78, %79 : vector<16x1xf32>
    %81 = math.rsqrt %80 : vector<16x1xf32>
    %82 = arith.mulf %48, %81 : vector<16x1xf32>
    %83 = arith.mulf %69, %82 : vector<16x1xf32>
    %84 = arith.subf %49, %83 : vector<16x1xf32>
    %85 = vector.broadcast %82 : vector<16x1xf32> to vector<16x256xf32>
    %86 = arith.mulf %65, %85 : vector<16x256xf32>
    %87 = vector.broadcast %84 : vector<16x1xf32> to vector<16x256xf32>
    %88 = arith.addf %86, %87 : vector<16x256xf32>
    %cst_51 = arith.constant 0.000000e+00 : f32
    %89 = vector.broadcast %cst_51 : f32 to vector<16x256xf32>
    %90 = arith.maximumf %88, %89 : vector<16x256xf32>
    %c0_52 = arith.constant 0 : index
    %c2 = arith.constant 2 : index
    %91 = vector.load %arg2[%c0_52, %c2] : memref<16x8xf32, #tpu.memory_space<vmem>>, vector<16x1xf32>
    %c0_53 = arith.constant 0 : index
    %c3 = arith.constant 3 : index
    %92 = vector.load %arg2[%c0_53, %c3] : memref<16x8xf32, #tpu.memory_space<vmem>>, vector<16x1xf32>
    %c1_i32_54 = arith.constant 1 : i32
    %93 = tpu.dynamic_rotate %90 by %c1_i32_54 dim 1 : vector<16x256xf32>, i32 -> vector<16x256xf32>
    %94 = arith.mulf %93, %30 : vector<16x256xf32>
    %95 = arith.truncf %94 : vector<16x256xf32> to vector<16x256xbf16>
    %c0_55 = arith.constant 0 : index
    %c0_56 = arith.constant 0 : index
    %96 = vector.load %arg5[%c0_55, %c0_56] : memref<48x256xbf16, #tpu.memory_space<vmem>>, vector<16x256xbf16>
    tpu.vector_store %arg5[%c0_55, %c0_56], %95 {strides = array<i32>} : memref<48x256xbf16, #tpu.memory_space<vmem>>, vector<16x256xbf16>,
    %97 = arith.truncf %90 : vector<16x256xf32> to vector<16x256xbf16>
    %c16_57 = arith.constant 16 : index
    %c0_58 = arith.constant 0 : index
    %98 = vector.load %arg5[%c16_57, %c0_58] : memref<48x256xbf16, #tpu.memory_space<vmem>>, vector<16x256xbf16>
    tpu.vector_store %arg5[%c16_57, %c0_58], %97 {strides = array<i32>} : memref<48x256xbf16, #tpu.memory_space<vmem>>, vector<16x256xbf16>,
    %c255_i32_59 = arith.constant 255 : i32
    %99 = tpu.dynamic_rotate %90 by %c255_i32_59 dim 1 : vector<16x256xf32>, i32 -> vector<16x256xf32>
    %100 = arith.mulf %99, %34 : vector<16x256xf32>
    %101 = arith.truncf %100 : vector<16x256xf32> to vector<16x256xbf16>
    %c32_60 = arith.constant 32 : index
    %c0_61 = arith.constant 0 : index
    %102 = vector.load %arg5[%c32_60, %c0_61] : memref<48x256xbf16, #tpu.memory_space<vmem>>, vector<16x256xbf16>
    tpu.vector_store %arg5[%c32_60, %c0_61], %101 {strides = array<i32>} : memref<48x256xbf16, #tpu.memory_space<vmem>>, vector<16x256xbf16>,
    %c1_62 = arith.constant 1 : index
    %c0_63 = arith.constant 0 : index
    %c0_64 = arith.constant 0 : index
    %103 = vector.load %arg1[%c1_62, %c0_63, %c0_64] : memref<4x16x48xbf16, #tpu.memory_space<vmem>>, vector<1x16x48xbf16>
    %104 = vector.shape_cast %103 : vector<1x16x48xbf16> to vector<16x48xbf16>
    %c0_65 = arith.constant 0 : index
    %c0_66 = arith.constant 0 : index
    %105 = vector.load %arg5[%c0_65, %c0_66] : memref<48x256xbf16, #tpu.memory_space<vmem>>, vector<48x256xbf16>
    %cst_67 = arith.constant dense<0.000000e+00> : vector<16x256xf32>
    %106 = tpu.matmul %104, %105, %cst_67 {dimension_numbers = #tpu.dot_dimension_numbers<[1], [0], [0], [1], [0, 0, 1, 1], [], []>} : vector<16x48xbf16>, vector<48x256xbf16>, vector<16x256xf32> -> vector<16x256xf32>
    %cst_68 = arith.constant dense<0.000000e+00> : vector<16xf32>
    %107 = vector.multi_reduction <add>, %106, %cst_68 [1] : vector<16x256xf32> to vector<16xf32>
    %108 = vector.shape_cast %107 : vector<16xf32> to vector<16x1xf32>
    %cst_69 = arith.constant 3.906250e-03 : f32
    %109 = vector.broadcast %cst_69 : f32 to vector<16x1xf32>
    %110 = arith.mulf %108, %109 : vector<16x1xf32>
    %111 = arith.mulf %106, %106 : vector<16x256xf32>
    %cst_70 = arith.constant dense<0.000000e+00> : vector<16xf32>
    %112 = vector.multi_reduction <add>, %111, %cst_70 [1] : vector<16x256xf32> to vector<16xf32>
    %113 = vector.shape_cast %112 : vector<16xf32> to vector<16x1xf32>
    %cst_71 = arith.constant 3.906250e-03 : f32
    %114 = vector.broadcast %cst_71 : f32 to vector<16x1xf32>
    %115 = arith.mulf %113, %114 : vector<16x1xf32>
    %116 = arith.mulf %110, %110 : vector<16x1xf32>
    %117 = arith.subf %115, %116 : vector<16x1xf32>
    %cst_72 = arith.constant 0.000000e+00 : f32
    %118 = vector.broadcast %cst_72 : f32 to vector<16x1xf32>
    %119 = arith.maximumf %117, %118 : vector<16x1xf32>
    %cst_73 = arith.constant 9.99999974E-6 : f32
    %120 = vector.broadcast %cst_73 : f32 to vector<16x1xf32>
    %121 = arith.addf %119, %120 : vector<16x1xf32>
    %122 = math.rsqrt %121 : vector<16x1xf32>
    %123 = arith.mulf %91, %122 : vector<16x1xf32>
    %124 = arith.mulf %110, %123 : vector<16x1xf32>
    %125 = arith.subf %92, %124 : vector<16x1xf32>
    %126 = vector.broadcast %123 : vector<16x1xf32> to vector<16x256xf32>
    %127 = arith.mulf %106, %126 : vector<16x256xf32>
    %128 = vector.broadcast %125 : vector<16x1xf32> to vector<16x256xf32>
    %129 = arith.addf %127, %128 : vector<16x256xf32>
    %cst_74 = arith.constant 0.000000e+00 : f32
    %130 = vector.broadcast %cst_74 : f32 to vector<16x256xf32>
    %131 = arith.maximumf %129, %130 : vector<16x256xf32>
    %c0_75 = arith.constant 0 : index
    %c4 = arith.constant 4 : index
    %132 = vector.load %arg2[%c0_75, %c4] : memref<16x8xf32, #tpu.memory_space<vmem>>, vector<16x1xf32>
    %c0_76 = arith.constant 0 : index
    %c5 = arith.constant 5 : index
    %133 = vector.load %arg2[%c0_76, %c5] : memref<16x8xf32, #tpu.memory_space<vmem>>, vector<16x1xf32>
    %c1_i32_77 = arith.constant 1 : i32
    %134 = tpu.dynamic_rotate %131 by %c1_i32_77 dim 1 : vector<16x256xf32>, i32 -> vector<16x256xf32>
    %135 = arith.mulf %134, %30 : vector<16x256xf32>
    %136 = arith.truncf %135 : vector<16x256xf32> to vector<16x256xbf16>
    %c0_78 = arith.constant 0 : index
    %c0_79 = arith.constant 0 : index
    %137 = vector.load %arg5[%c0_78, %c0_79] : memref<48x256xbf16, #tpu.memory_space<vmem>>, vector<16x256xbf16>
    tpu.vector_store %arg5[%c0_78, %c0_79], %136 {strides = array<i32>} : memref<48x256xbf16, #tpu.memory_space<vmem>>, vector<16x256xbf16>,
    %138 = arith.truncf %131 : vector<16x256xf32> to vector<16x256xbf16>
    %c16_80 = arith.constant 16 : index
    %c0_81 = arith.constant 0 : index
    %139 = vector.load %arg5[%c16_80, %c0_81] : memref<48x256xbf16, #tpu.memory_space<vmem>>, vector<16x256xbf16>
    tpu.vector_store %arg5[%c16_80, %c0_81], %138 {strides = array<i32>} : memref<48x256xbf16, #tpu.memory_space<vmem>>, vector<16x256xbf16>,
    %c255_i32_82 = arith.constant 255 : i32
    %140 = tpu.dynamic_rotate %131 by %c255_i32_82 dim 1 : vector<16x256xf32>, i32 -> vector<16x256xf32>
    %141 = arith.mulf %140, %34 : vector<16x256xf32>
    %142 = arith.truncf %141 : vector<16x256xf32> to vector<16x256xbf16>
    %c32_83 = arith.constant 32 : index
    %c0_84 = arith.constant 0 : index
    %143 = vector.load %arg5[%c32_83, %c0_84] : memref<48x256xbf16, #tpu.memory_space<vmem>>, vector<16x256xbf16>
    tpu.vector_store %arg5[%c32_83, %c0_84], %142 {strides = array<i32>} : memref<48x256xbf16, #tpu.memory_space<vmem>>, vector<16x256xbf16>,
    %c2_85 = arith.constant 2 : index
    %c0_86 = arith.constant 0 : index
    %c0_87 = arith.constant 0 : index
    %144 = vector.load %arg1[%c2_85, %c0_86, %c0_87] : memref<4x16x48xbf16, #tpu.memory_space<vmem>>, vector<1x16x48xbf16>
    %145 = vector.shape_cast %144 : vector<1x16x48xbf16> to vector<16x48xbf16>
    %c0_88 = arith.constant 0 : index
    %c0_89 = arith.constant 0 : index
    %146 = vector.load %arg5[%c0_88, %c0_89] : memref<48x256xbf16, #tpu.memory_space<vmem>>, vector<48x256xbf16>
    %cst_90 = arith.constant dense<0.000000e+00> : vector<16x256xf32>
    %147 = tpu.matmul %145, %146, %cst_90 {dimension_numbers = #tpu.dot_dimension_numbers<[1], [0], [0], [1], [0, 0, 1, 1], [], []>} : vector<16x48xbf16>, vector<48x256xbf16>, vector<16x256xf32> -> vector<16x256xf32>
    %cst_91 = arith.constant dense<0.000000e+00> : vector<16xf32>
    %148 = vector.multi_reduction <add>, %147, %cst_91 [1] : vector<16x256xf32> to vector<16xf32>
    %149 = vector.shape_cast %148 : vector<16xf32> to vector<16x1xf32>
    %cst_92 = arith.constant 3.906250e-03 : f32
    %150 = vector.broadcast %cst_92 : f32 to vector<16x1xf32>
    %151 = arith.mulf %149, %150 : vector<16x1xf32>
    %152 = arith.mulf %147, %147 : vector<16x256xf32>
    %cst_93 = arith.constant dense<0.000000e+00> : vector<16xf32>
    %153 = vector.multi_reduction <add>, %152, %cst_93 [1] : vector<16x256xf32> to vector<16xf32>
    %154 = vector.shape_cast %153 : vector<16xf32> to vector<16x1xf32>
    %cst_94 = arith.constant 3.906250e-03 : f32
    %155 = vector.broadcast %cst_94 : f32 to vector<16x1xf32>
    %156 = arith.mulf %154, %155 : vector<16x1xf32>
    %157 = arith.mulf %151, %151 : vector<16x1xf32>
    %158 = arith.subf %156, %157 : vector<16x1xf32>
    %cst_95 = arith.constant 0.000000e+00 : f32
    %159 = vector.broadcast %cst_95 : f32 to vector<16x1xf32>
    %160 = arith.maximumf %158, %159 : vector<16x1xf32>
    %cst_96 = arith.constant 9.99999974E-6 : f32
    %161 = vector.broadcast %cst_96 : f32 to vector<16x1xf32>
    %162 = arith.addf %160, %161 : vector<16x1xf32>
    %163 = math.rsqrt %162 : vector<16x1xf32>
    %164 = arith.mulf %132, %163 : vector<16x1xf32>
    %165 = arith.mulf %151, %164 : vector<16x1xf32>
    %166 = arith.subf %133, %165 : vector<16x1xf32>
    %167 = vector.broadcast %164 : vector<16x1xf32> to vector<16x256xf32>
    %168 = arith.mulf %147, %167 : vector<16x256xf32>
    %169 = vector.broadcast %166 : vector<16x1xf32> to vector<16x256xf32>
    %170 = arith.addf %168, %169 : vector<16x256xf32>
    %cst_97 = arith.constant 0.000000e+00 : f32
    %171 = vector.broadcast %cst_97 : f32 to vector<16x256xf32>
    %172 = arith.maximumf %170, %171 : vector<16x256xf32>
    %c0_98 = arith.constant 0 : index
    %c6 = arith.constant 6 : index
    %173 = vector.load %arg2[%c0_98, %c6] : memref<16x8xf32, #tpu.memory_space<vmem>>, vector<16x1xf32>
    %c0_99 = arith.constant 0 : index
    %c7 = arith.constant 7 : index
    %174 = vector.load %arg2[%c0_99, %c7] : memref<16x8xf32, #tpu.memory_space<vmem>>, vector<16x1xf32>
    %c1_i32_100 = arith.constant 1 : i32
    %175 = tpu.dynamic_rotate %172 by %c1_i32_100 dim 1 : vector<16x256xf32>, i32 -> vector<16x256xf32>
    %176 = arith.mulf %175, %30 : vector<16x256xf32>
    %177 = arith.truncf %176 : vector<16x256xf32> to vector<16x256xbf16>
    %c0_101 = arith.constant 0 : index
    %c0_102 = arith.constant 0 : index
    %178 = vector.load %arg5[%c0_101, %c0_102] : memref<48x256xbf16, #tpu.memory_space<vmem>>, vector<16x256xbf16>
    tpu.vector_store %arg5[%c0_101, %c0_102], %177 {strides = array<i32>} : memref<48x256xbf16, #tpu.memory_space<vmem>>, vector<16x256xbf16>,
    %179 = arith.truncf %172 : vector<16x256xf32> to vector<16x256xbf16>
    %c16_103 = arith.constant 16 : index
    %c0_104 = arith.constant 0 : index
    %180 = vector.load %arg5[%c16_103, %c0_104] : memref<48x256xbf16, #tpu.memory_space<vmem>>, vector<16x256xbf16>
    tpu.vector_store %arg5[%c16_103, %c0_104], %179 {strides = array<i32>} : memref<48x256xbf16, #tpu.memory_space<vmem>>, vector<16x256xbf16>,
    %c255_i32_105 = arith.constant 255 : i32
    %181 = tpu.dynamic_rotate %172 by %c255_i32_105 dim 1 : vector<16x256xf32>, i32 -> vector<16x256xf32>
    %182 = arith.mulf %181, %34 : vector<16x256xf32>
    %183 = arith.truncf %182 : vector<16x256xf32> to vector<16x256xbf16>
    %c32_106 = arith.constant 32 : index
    %c0_107 = arith.constant 0 : index
    %184 = vector.load %arg5[%c32_106, %c0_107] : memref<48x256xbf16, #tpu.memory_space<vmem>>, vector<16x256xbf16>
    tpu.vector_store %arg5[%c32_106, %c0_107], %183 {strides = array<i32>} : memref<48x256xbf16, #tpu.memory_space<vmem>>, vector<16x256xbf16>,
    %c3_108 = arith.constant 3 : index
    %c0_109 = arith.constant 0 : index
    %c0_110 = arith.constant 0 : index
    %185 = vector.load %arg1[%c3_108, %c0_109, %c0_110] : memref<4x16x48xbf16, #tpu.memory_space<vmem>>, vector<1x16x48xbf16>
    %186 = vector.shape_cast %185 : vector<1x16x48xbf16> to vector<16x48xbf16>
    %c0_111 = arith.constant 0 : index
    %c0_112 = arith.constant 0 : index
    %187 = vector.load %arg5[%c0_111, %c0_112] : memref<48x256xbf16, #tpu.memory_space<vmem>>, vector<48x256xbf16>
    %cst_113 = arith.constant dense<0.000000e+00> : vector<16x256xf32>
    %188 = tpu.matmul %186, %187, %cst_113 {dimension_numbers = #tpu.dot_dimension_numbers<[1], [0], [0], [1], [0, 0, 1, 1], [], []>} : vector<16x48xbf16>, vector<48x256xbf16>, vector<16x256xf32> -> vector<16x256xf32>
    %cst_114 = arith.constant dense<0.000000e+00> : vector<16xf32>
    %189 = vector.multi_reduction <add>, %188, %cst_114 [1] : vector<16x256xf32> to vector<16xf32>
    %190 = vector.shape_cast %189 : vector<16xf32> to vector<16x1xf32>
    %cst_115 = arith.constant 3.906250e-03 : f32
    %191 = vector.broadcast %cst_115 : f32 to vector<16x1xf32>
    %192 = arith.mulf %190, %191 : vector<16x1xf32>
    %193 = arith.mulf %188, %188 : vector<16x256xf32>
    %cst_116 = arith.constant dense<0.000000e+00> : vector<16xf32>
    %194 = vector.multi_reduction <add>, %193, %cst_116 [1] : vector<16x256xf32> to vector<16xf32>
    %195 = vector.shape_cast %194 : vector<16xf32> to vector<16x1xf32>
    %cst_117 = arith.constant 3.906250e-03 : f32
    %196 = vector.broadcast %cst_117 : f32 to vector<16x1xf32>
    %197 = arith.mulf %195, %196 : vector<16x1xf32>
    %198 = arith.mulf %192, %192 : vector<16x1xf32>
    %199 = arith.subf %197, %198 : vector<16x1xf32>
    %cst_118 = arith.constant 0.000000e+00 : f32
    %200 = vector.broadcast %cst_118 : f32 to vector<16x1xf32>
    %201 = arith.maximumf %199, %200 : vector<16x1xf32>
    %cst_119 = arith.constant 9.99999974E-6 : f32
    %202 = vector.broadcast %cst_119 : f32 to vector<16x1xf32>
    %203 = arith.addf %201, %202 : vector<16x1xf32>
    %204 = math.rsqrt %203 : vector<16x1xf32>
    %205 = arith.mulf %173, %204 : vector<16x1xf32>
    %206 = arith.mulf %192, %205 : vector<16x1xf32>
    %207 = arith.subf %174, %206 : vector<16x1xf32>
    %208 = vector.broadcast %205 : vector<16x1xf32> to vector<16x256xf32>
    %209 = arith.mulf %188, %208 : vector<16x256xf32>
    %210 = vector.broadcast %207 : vector<16x1xf32> to vector<16x256xf32>
    %211 = arith.addf %209, %210 : vector<16x256xf32>
    %cst_120 = arith.constant 0.000000e+00 : f32
    %212 = vector.broadcast %cst_120 : f32 to vector<16x256xf32>
    %213 = arith.maximumf %211, %212 : vector<16x256xf32>
    %c0_121 = arith.constant 0 : index
    %c0_122 = arith.constant 0 : index
    %214 = vector.load %arg3[%c0_121, %c0_122] : memref<16x256xf32, #tpu.memory_space<vmem>>, vector<16x256xf32>
    tpu.vector_store %arg3[%c0_121, %c0_122], %213 {strides = array<i32>} : memref<16x256xf32, #tpu.memory_space<vmem>>, vector<16x256xf32>,
    return
  }
}

</mosaic_0001>

<bundles_post_ra>
// kernel: tpu_custom_call.1
= control target key start
LH: loop header
LB: loop body
LE: loop exit
PB: predicated region body
PF: predicated region fallthrough
CT: control target
= control target key end

     0   :  { %8 = vsyncpa [#allocation6], 0  ;;  %s1582_s0 = inlined_call_operand.vmem [shape: f32[2,8,128], index: 0, kind: input, shape index: {}]   ;;  %s1583_s1 = inlined_call_operand.hbm [shape: bf16[4,16,48], index: 1, kind: input, shape index: {}]   ;;  %s1584_s2 = inlined_call_operand.vmem [shape: f32[16,8], index: 2, kind: input, shape index: {}]   ;;  %s1585_s3 = inlined_call_operand.hbm [shape: f32[16,256], index: 3, kind: output, shape index: {}]  }
   0x1   :  { %9 = vsyncpa [#allocation7], 0  ;;  %s1357_s12 = smov [#allocation5]  }
   0x2   :  { %s15_s13 = sshll.u32 %s1357_s12, 4  ;;  %s16_s13 = int_to_ptr.vmem [resolvable:$true] %s15_s13 }
   0x3   :  { %s1317_s14 = scalar_lea.vmem %s16_s13, 512  ;;  %p1322_p1 = scmp.lt.s32.totalorder %s16_s13, %s16_s13 }
   0x4   :  { %p1318_p0 = scmp.ne.s32.totalorder %s16_s13, %s1317_s14  ;;  %p1323_p2 = scmp.lt.s32.totalorder %s1317_s14, %s1317_s14 }
   0x6   :  { %p1324_p3 = por %p1323_p2, %p1322_p1 }
   0x8   :  { %p1325_p4 = pnand %p1324_p3, %p1318_p0 }
   0xa   :  { %1328 = shalt.err (!%p1325_p4)
}
   0xb   :  { %s1358_s15 = smov 64   ;;  %s1359_s16 = smov 4  }
   0xc   :  { %21 = dma.hbm_to_vmem [thread:$0]  %s1583_s1, 512, %s16_s13, [#allocation6], %s1358_s15, %s1358_s15, %s1359_s16  }
   0xd   :  { %1349 = dma.done.wait [#allocation6], 512  }
   0xe   :  { %1350 = vsyncadd [#allocation6], 4294966784  ;;  %v61_v0 = vld [vmem:[%s1582_s0] sm:$0xff] }
   0xf   :  { %70 = vsyncadd [#allocation4], 128  ;;  %v1159_v1 = vld [vmem:[%s1582_s0 + $0x8] sm:$0xff] }
  0x10   :  { %116 = vsyncadd [#allocation4 + $0x1], 128  ;;  %v117_v2 = vlaneseq  ;;  %v1360_v5 = vmov 0.0  }
  0x12   :  { %v1403_v3 = vand.u32 127, %v117_v2 }
  0x14   :  { %v119_v4 = vadd.s32 128, %v1403_v3  ;;  %vm144_vm0 = vcmp.ne.s32.totalorder %v1403_v3, 0  ;;  %vm150_vm1 = vcmp.ne.s32.totalorder %v1403_v3, 127 }
  0x15   :  { %v1408_v6 = vsel %vm144_vm0, 1.0, %v1360_v5  ;;  %v1410_v7 = vsel %vm150_vm1, 1.0, %v1360_v5 }
  0x16   :  { %v131_v8 = vand.u32 127, %v119_v4 }
  0x18   :  { %vm145_vm2 = vcmp.ne.s32.totalorder %v131_v8, 0  ;;  %vm151_vm3 = vcmp.ne.s32.totalorder %v131_v8, 127 }
  0x19   :  { %v1412_v9 = vsel %vm145_vm2, 1.0, %v1360_v5  ;;  %v1414_v10 = vsel %vm151_vm3, 1.0, %v1360_v5 }
  0x1a   :  { %1351 = dma.done.wait [#allocation4], 128 }
  0x1b   :  { %1352 = vsyncadd [#allocation4], 4294967168  ;;  %s1361_s0 = smov 127   ;;  %s1362_s1 = smov 1  }
  0x1c   :  { %199 = vrot.lane.b32.xlu0 %v61_v0, %s1361_s0  ;;  %172 = vrot.lane.b32.xlu1 %v61_v0, %s1362_s1 }
  0x1d   :  { %1353 = dma.done.wait [#allocation4 + $0x1], 128 }
  0x1e   :  { %1354 = vsyncadd [#allocation4 + $0x1], 4294967168  ;;  %v1363_v11 = vmov 0   ;;  %vm203_vm4 = vcmp.lt.s32.totalorder %v1403_v3, 127  ;;  %vm176_vm5 = vcmp.lt.s32.totalorder %v1403_v3, 1  ;;  %v1221_v22 = vpack.c.bf16 %v1159_v1, %v61_v0  ;;  %v1289_v33 = vld [vmem:[#allocation5] sm:$0xff]  }
  0x1f   :  { %296 = vmatprep.mubr.bf16.mxu0 %v1363_v11  ;;  %1276 = vset.pattern.permute.xlu1 %v1363_v11  ;;  %vm260_vm6 = vcmask 392192   ;;  %v1364_v62 = vmov 1   ;;  %v1448_v63 = vld [vmem:[%s1584_s2] sm:$0xff]  ;;  %v1454_v2 = vld [vmem:[%s1584_s2 + $0x8] sm:$0xff]  ;;  %s1371_s2 = smov [#allocation8]  }
  0x20   :  { %538 = vmatprep.mubr.bf16.mxu1 %v1363_v11  ;;  %201 = vrot.lane.b32.xlu0 %v1159_v1, %s1361_s0  ;;  %v1172_v28 = vcombine.high %v1221_v22, %v1363_v11  ;;  %v1171_v30 = vcombine.low %v1221_v22, %v1363_v11  ;;  %s1118_s27 = sshll.u32 %s1371_s2, 4  ;;  %s1119_s27 = int_to_ptr.vmem [resolvable:$true] %s1118_s27 }
  0x21   :  { %174 = vrot.lane.b32.xlu1 %v1159_v1, %s1362_s1  ;;  %1277 = vset.pattern.permute.xlu0 %v1364_v62  ;;  %s1329_s28 = scalar_lea.vmem %s1119_s27, 512  ;;  %p1334_p6 = scmp.lt.s32.totalorder %s1119_s27, %s1119_s27 }
  0x22   :  { %p1330_p5 = scmp.ne.s32.totalorder %s1119_s27, %s1329_s28  ;;  %p1335_p7 = scmp.lt.s32.totalorder %s1329_s28, %s1329_s28 }
  0x24   :  { %p1336_p8 = por %p1335_p7, %p1334_p6 }
  0x26   :  { %p1337_p9 = pnand %p1336_p8, %p1330_p5 }
  0x8e   :  { %v200_v12 = vpop.permute.xlu0 %199  ;;  %v173_v13 = vpop.permute.xlu1 %172 }
  0x92   :  { %v202_v14 = vpop.permute.xlu0 %201 }
  0x93   :  { %v175_v15 = vpop.permute.xlu1 %174  ;;  %v204_v16 = vsel %vm203_vm4, %v200_v12, %v202_v14  ;;  %v205_v17 = vsel %vm203_vm4, %v202_v14, %v200_v12 }
  0x94   :  { %v177_v18 = vsel %vm176_vm5, %v173_v13, %v175_v15  ;;  %v178_v19 = vsel %vm176_vm5, %v175_v15, %v173_v13  ;;  %v206_v20 = vmul.f32 %v1410_v7, %v204_v16  ;;  %v207_v21 = vmul.f32 %v1414_v10, %v205_v17 }
  0x95   :  { %v179_v23 = vmul.f32 %v1408_v6, %v178_v19  ;;  %v180_v24 = vmul.f32 %v1412_v9, %v177_v18 }
  0x96   :  { %v1222_v25 = vpack.c.bf16 %v207_v21, %v206_v20 }
  0x97   :  { %v1220_v29 = vpack.c.bf16 %v180_v24, %v179_v23 }
  0x98   :  { %v1174_v26 = vcombine.high %v1222_v25, %v1363_v11  ;;  %v1173_v27 = vcombine.low %v1222_v25, %v1363_v11 }
  0x99   :  { %v1170_v31 = vcombine.high %v1220_v29, %v1363_v11  ;;  %v1169_v32 = vcombine.low %v1220_v29, %v1363_v11 }
  0x9a   :  { %274 = vmatprep.subr.bf16.mxu0 %v1174_v26 }
  0x9b   :  { %275 = vmatpush1.bf16.msra.mxu0 %v1173_v27 }
  0x9c   :  { %276 = vmatprep.subr.bf16.mxu0 %v1172_v28 }
  0x9f   :  { %277 = vmatpush1.bf16.msra.mxu0 %v1171_v30 }
  0xa0   :  { %278 = vmatprep.subr.bf16.mxu0 %v1170_v31 }
  0xa3   :  { %279 = vmatpush1.bf16.msra.mxu0 %v1169_v32 }
  0xa6   :  { %1175 = vmatmul.mubr.msk.bf16.vlgmr.msra.gmra.mxu0 %vm260_vm6, %v1289_v33 }
  0xa7   :  { %780 = vmatprep.mubr.bf16.mxu0 %v1363_v11 }
 0x166   :  { %v298_v34 = vpop.f32.mrf.mxu0 }
 0x167   :  { %v315_v39 = vmul.f32 %v298_v34, %v298_v34 }
 0x168   :  { %v300_v35 = vpop.f32.mrf.mxu0 }
 0x169   :  { %v307_v36 = vadd.f32 %v300_v35, %v298_v34  ;;  %v316_v37 = vmul.f32 %v300_v35, %v300_v35 }
 0x16a   :  { %v302_v38 = vpop.f32.mrf.mxu0 }
 0x16b   :  { %308 = vadd.xlane.f32.xlu0 %v307_v36  ;;  %v319_v41 = vadd.f32 %v316_v37, %v315_v39  ;;  %v317_v44 = vmul.f32 %v302_v38, %v302_v38 }
 0x16c   :  { %v304_v40 = vpop.f32.mrf.mxu0 }
 0x16d   :  { %v310_v42 = vadd.f32 %v304_v40, %v302_v38  ;;  %v318_v43 = vmul.f32 %v304_v40, %v304_v40 }
 0x16f   :  { %320 = vadd.xlane.f32.xlu0 %v319_v41  ;;  %311 = vadd.xlane.f32.xlu1 %v310_v42  ;;  %v322_v45 = vadd.f32 %v318_v43, %v317_v44 }
 0x173   :  { %323 = vadd.xlane.f32.xlu0 %v322_v45 }
 0x1f4   :  { %v309_v46 = vpop.xlane.xlu0 %308 }
 0x1f5   :  { %v313_v47 = vmul.f32 0.00390625, %v309_v46 }
 0x1f7   :  { %v327_v50 = vmul.f32 %v313_v47, %v313_v47 }
 0x1f8   :  { %v321_v48 = vpop.xlane.xlu0 %320  ;;  %v312_v49 = vpop.xlane.xlu1 %311 }
 0x1f9   :  { %v325_v51 = vmul.f32 0.00390625, %v321_v48  ;;  %v314_v52 = vmul.f32 0.00390625, %v312_v49 }
 0x1fb   :  { %v329_v53 = vsub.f32 %v325_v51, %v327_v50  ;;  %v328_v56 = vmul.f32 %v314_v52, %v314_v52 }
 0x1fc   :  { %v324_v54 = vpop.xlane.xlu0 %323 }
 0x1fd   :  { %v331_v55 = vmax.f32 %v329_v53, 0.0  ;;  %v326_v57 = vmul.f32 0.00390625, %v324_v54 }
 0x1ff   :  { %v333_v58 = vadd.f32 1e-05, %v331_v55  ;;  %v330_v59 = vsub.f32 %v326_v57, %v328_v56 }
 0x201   :  { %1293 = vrsqrt.f32 %v333_v58  ;;  %v332_v60 = vmax.f32 %v330_v59, 0.0 }
 0x203   :  { %v334_v61 = vadd.f32 1e-05, %v332_v60 }
 0x205   :  { %1295 = vrsqrt.f32 %v334_v61 }
 0x20e   :  { %v1294_v0 = vpop.eup %1293 }
 0x20f   :  { %v337_v1 = vmul.f32 %v1294_v0, %v1448_v63  ;;  %v1290_v0 = vld [vmem:[#allocation5 + $0x8] sm:$0xff]  }
 0x211   :  { %v339_v4 = vmul.f32 %v337_v1, %v313_v47 }
 0x212   :  { %v1296_v5 = vpop.eup %1295 }
 0x213   :  { %343 = vrot.lane.b32.xlu1 %v339_v4, %s1362_s1  ;;  %v338_v8 = vmul.f32 %v1296_v5, %v1454_v2 }
 0x215   :  { %v340_v12 = vmul.f32 %v338_v8, %v314_v52 }
 0x217   :  { %345 = vrot.lane.b32.xlu0 %v340_v12, %s1362_s1  ;;  %353 = vperm.xlu1 %1276, %v337_v1  }
 0x21b   :  { %358 = vperm.xlu1 %1276, %v338_v8  }
 0x21f   :  { %1278 = vset.pattern.permute.xlu1 %v1364_v62 }
 0x285   :  { %v344_v13 = vpop.permute.xlu1 %343 }
 0x286   :  { %v349_v14 = vsub.f32 %v1448_v63, %v344_v13 }
 0x288   :  { %367 = vperm.xlu0 %1277, %v349_v14  }
 0x289   :  { %v346_v15 = vpop.permute.xlu0 %345 }
 0x28a   :  { %v350_v16 = vsub.f32 %v1454_v2, %v346_v15 }
 0x28c   :  { %372 = vperm.xlu1 %1278, %v350_v16  }
 0x292   :  { %v354_v17 = vpop.permute.xlu1 %353 }
 0x293   :  { %v361_v18 = vmul.f32 %v354_v17, %v298_v34  ;;  %v362_v21 = vmul.f32 %v354_v17, %v300_v35 }
 0x296   :  { %v359_v19 = vpop.permute.xlu1 %358 }
 0x297   :  { %v363_v23 = vmul.f32 %v359_v19, %v302_v38  ;;  %v364_v24 = vmul.f32 %v359_v19, %v304_v40 }
 0x303   :  { %v368_v20 = vpop.permute.xlu0 %367 }
 0x304   :  { %v375_v22 = vadd.f32 %v368_v20, %v361_v18  ;;  %v376_v25 = vadd.f32 %v368_v20, %v362_v21  ;;  %v1365_v20 = vmov 2  }
 0x305   :  { %1279 = vset.pattern.permute.xlu1 %v1365_v20  ;;  %1280 = vset.pattern.permute.xlu0 %v1365_v20 }
 0x306   :  { %v379_v26 = vmax.f32 %v375_v22, 0.0  ;;  %v380_v30 = vmax.f32 %v376_v25, 0.0 }
 0x307   :  { %v373_v27 = vpop.permute.xlu1 %372 }
 0x308   :  { %v377_v28 = vadd.f32 %v373_v27, %v363_v23  ;;  %v378_v29 = vadd.f32 %v373_v27, %v364_v24  ;;  %429 = vrot.lane.b32.xlu1 %v379_v26, %s1361_s0 }
 0x30a   :  { %v381_v31 = vmax.f32 %v377_v28, 0.0  ;;  %v382_v32 = vmax.f32 %v378_v29, 0.0 }
 0x30c   :  { %433 = vrot.lane.b32.xlu1 %v380_v30, %s1361_s0  ;;  %431 = vrot.lane.b32.xlu0 %v381_v31, %s1361_s0  ;;  %v1244_v33 = vpack.c.bf16 %v382_v32, %v380_v30  ;;  %v1243_v34 = vpack.c.bf16 %v381_v31, %v379_v26 }
 0x310   :  { %385 = vrot.lane.b32.xlu1 %v379_v26, %s1362_s1  ;;  %435 = vrot.lane.b32.xlu0 %v382_v32, %s1361_s0 }
 0x314   :  { %389 = vrot.lane.b32.xlu1 %v380_v30, %s1362_s1  ;;  %387 = vrot.lane.b32.xlu0 %v381_v31, %s1362_s1 }
 0x318   :  { %391 = vrot.lane.b32.xlu0 %v382_v32, %s1362_s1 }
 0x37a   :  { %v430_v35 = vpop.permute.xlu1 %429 }
 0x37e   :  { %v432_v36 = vpop.permute.xlu0 %431  ;;  %v434_v37 = vpop.permute.xlu1 %433 }
 0x37f   :  { %v437_v38 = vsel %vm203_vm4, %v430_v35, %v434_v37  ;;  %v439_v39 = vsel %vm203_vm4, %v434_v37, %v430_v35 }
 0x380   :  { %v441_v44 = vmul.f32 %v1410_v7, %v437_v38  ;;  %v442_v46 = vmul.f32 %v1414_v10, %v439_v39 }
 0x382   :  { %v436_v40 = vpop.permute.xlu0 %435  ;;  %v386_v41 = vpop.permute.xlu1 %385 }
 0x383   :  { %v438_v42 = vsel %vm203_vm4, %v432_v36, %v436_v40  ;;  %v440_v43 = vsel %vm203_vm4, %v436_v40, %v432_v36 }
 0x384   :  { %v443_v45 = vmul.f32 %v1410_v7, %v438_v42  ;;  %v444_v47 = vmul.f32 %v1414_v10, %v440_v43  ;;  %v1366_v42 = vmov 3  }
 0x386   :  { %v388_v48 = vpop.permute.xlu0 %387  ;;  %v390_v49 = vpop.permute.xlu1 %389  ;;  %v1246_v50 = vpack.c.bf16 %v444_v47, %v442_v46  ;;  %v1245_v51 = vpack.c.bf16 %v443_v45, %v441_v44 }
 0x387   :  { %v393_v52 = vsel %vm176_vm5, %v386_v41, %v390_v49  ;;  %v395_v53 = vsel %vm176_vm5, %v390_v49, %v386_v41 }
 0x388   :  { %516 = vmatprep.subr.bf16.mxu1 %v1246_v50  ;;  %v397_v57 = vmul.f32 %v1408_v6, %v395_v53  ;;  %v398_v58 = vmul.f32 %v1412_v9, %v393_v52 }
 0x389   :  { %517 = vmatpush1.bf16.msra.mxu1 %v1245_v51 }
 0x38a   :  { %v392_v54 = vpop.permute.xlu0 %391  ;;  %518 = vmatprep.subr.bf16.mxu1 %v1244_v33 }
 0x38b   :  { %v394_v55 = vsel %vm176_vm5, %v388_v48, %v392_v54  ;;  %v396_v56 = vsel %vm176_vm5, %v392_v54, %v388_v48 }
 0x38c   :  { %v399_v59 = vmul.f32 %v1408_v6, %v396_v56  ;;  %v400_v60 = vmul.f32 %v1412_v9, %v394_v55 }
 0x38d   :  { %519 = vmatpush1.bf16.msra.mxu1 %v1243_v34 }
 0x38e   :  { %v1242_v61 = vpack.c.bf16 %v400_v60, %v398_v58  ;;  %v1241_v62 = vpack.c.bf16 %v399_v59, %v397_v57 }
 0x390   :  { %520 = vmatprep.subr.bf16.mxu1 %v1242_v61 }
 0x391   :  { %521 = vmatpush1.bf16.msra.mxu1 %v1241_v62 }
 0x394   :  { %1189 = vmatmul.mubr.msk.bf16.vlgmr.msra.gmra.mxu1 %vm260_vm6, %v1290_v0 }
 0x395   :  { %1022 = vmatprep.mubr.bf16.mxu1 %v1363_v11 }
 0x454   :  { %v540_v1 = vpop.f32.mrf.mxu1 }
 0x455   :  { %v557_v18 = vmul.f32 %v540_v1, %v540_v1 }
 0x456   :  { %v542_v4 = vpop.f32.mrf.mxu1 }
 0x457   :  { %v549_v5 = vadd.f32 %v542_v4, %v540_v1  ;;  %v558_v16 = vmul.f32 %v542_v4, %v542_v4 }
 0x458   :  { %v544_v8 = vpop.f32.mrf.mxu1 }
 0x459   :  { %550 = vadd.xlane.f32.xlu1 %v549_v5  ;;  %v559_v14 = vmul.f32 %v544_v8, %v544_v8  ;;  %v561_v19 = vadd.f32 %v558_v16, %v557_v18 }
 0x45a   :  { %v546_v12 = vpop.f32.mrf.mxu1 }
 0x45b   :  { %v552_v13 = vadd.f32 %v546_v12, %v544_v8  ;;  %v560_v15 = vmul.f32 %v546_v12, %v546_v12 }
 0x45d   :  { %553 = vadd.xlane.f32.xlu0 %v552_v13  ;;  %v564_v17 = vadd.f32 %v560_v15, %v559_v14 }
 0x45f   :  { %565 = vadd.xlane.f32.xlu1 %v564_v17 }
 0x461   :  { %562 = vadd.xlane.f32.xlu0 %v561_v19 }
 0x4e2   :  { %v551_v11 = vpop.xlane.xlu1 %550 }
 0x4e3   :  { %v555_v22 = vmul.f32 0.00390625, %v551_v11 }
 0x4e5   :  { %v569_v28 = vmul.f32 %v555_v22, %v555_v22 }
 0x4e6   :  { %v554_v21 = vpop.xlane.xlu0 %553 }
 0x4e7   :  { %v556_v23 = vmul.f32 0.00390625, %v554_v21 }
 0x4e8   :  { %v566_v24 = vpop.xlane.xlu1 %565 }
 0x4e9   :  { %v570_v25 = vmul.f32 %v556_v23, %v556_v23  ;;  %v568_v26 = vmul.f32 0.00390625, %v566_v24 }
 0x4ea   :  { %v563_v27 = vpop.xlane.xlu0 %562 }
 0x4eb   :  { %v572_v29 = vsub.f32 %v568_v26, %v570_v25  ;;  %v567_v30 = vmul.f32 0.00390625, %v563_v27 }
 0x4ed   :  { %v574_v31 = vmax.f32 %v572_v29, 0.0  ;;  %v571_v32 = vsub.f32 %v567_v30, %v569_v28 }
 0x4ef   :  { %v576_v33 = vadd.f32 1e-05, %v574_v31  ;;  %v573_v34 = vmax.f32 %v571_v32, 0.0 }
 0x4f1   :  { %1297 = vrsqrt.f32 %v576_v33  ;;  %v575_v35 = vadd.f32 1e-05, %v573_v34 }
 0x4f3   :  { %1299 = vrsqrt.f32 %v575_v35 }
 0x4fe   :  { %v1298_v36 = vpop.eup %1297 }
 0x4ff   :  { %v580_v37 = vmul.f32 %v1298_v36, %v1454_v2  ;;  %v1291_v36 = vld [vmem:[#allocation5 + $0x10] sm:$0xff]  }
 0x500   :  { %v1300_v38 = vpop.eup %1299 }
 0x501   :  { %v582_v39 = vmul.f32 %v580_v37, %v556_v23  ;;  %v579_v40 = vmul.f32 %v1300_v38, %v1448_v63 }
 0x503   :  { %587 = vrot.lane.b32.xlu1 %v582_v39, %s1362_s1  ;;  %v581_v41 = vmul.f32 %v579_v40, %v555_v22 }
 0x505   :  { %585 = vrot.lane.b32.xlu0 %v581_v41, %s1362_s1 }
 0x507   :  { %595 = vperm.xlu1 %1279, %v579_v40  }
 0x509   :  { %600 = vperm.xlu0 %1280, %v580_v37  }
 0x50b   :  { %1281 = vset.pattern.permute.xlu1 %v1366_v42 }
 0x575   :  { %v588_v45 = vpop.permute.xlu1 %587 }
 0x576   :  { %v592_v46 = vsub.f32 %v1454_v2, %v588_v45 }
 0x577   :  { %v586_v43 = vpop.permute.xlu0 %585 }
 0x578   :  { %v591_v44 = vsub.f32 %v1448_v63, %v586_v43 }
 0x57a   :  { %609 = vperm.xlu1 %1281, %v591_v44  }
 0x57e   :  { %614 = vperm.xlu1 %1281, %v592_v46  }
 0x582   :  { %v596_v47 = vpop.permute.xlu1 %595 }
 0x583   :  { %v603_v48 = vmul.f32 %v596_v47, %v540_v1  ;;  %v604_v51 = vmul.f32 %v596_v47, %v542_v4 }
 0x584   :  { %v601_v49 = vpop.permute.xlu0 %600 }
 0x585   :  { %v605_v53 = vmul.f32 %v601_v49, %v544_v8  ;;  %v606_v54 = vmul.f32 %v601_v49, %v546_v12  ;;  %v1367_v49 = vmov 4  }
 0x586   :  { %1282 = vset.pattern.permute.xlu1 %v1367_v49 }
 0x5f5   :  { %v610_v50 = vpop.permute.xlu1 %609 }
 0x5f6   :  { %v617_v52 = vadd.f32 %v610_v50, %v603_v48  ;;  %v618_v55 = vadd.f32 %v610_v50, %v604_v51 }
 0x5f8   :  { %v621_v56 = vmax.f32 %v617_v52, 0.0  ;;  %v622_v60 = vmax.f32 %v618_v55, 0.0 }
 0x5f9   :  { %v615_v57 = vpop.permute.xlu1 %614 }
 0x5fa   :  { %v619_v58 = vadd.f32 %v615_v57, %v605_v53  ;;  %v620_v59 = vadd.f32 %v615_v57, %v606_v54  ;;  %671 = vrot.lane.b32.xlu0 %v621_v56, %s1361_s0 }
 0x5fc   :  { %v623_v61 = vmax.f32 %v619_v58, 0.0  ;;  %v624_v62 = vmax.f32 %v620_v59, 0.0 }
 0x5fe   :  { %v1249_v0 = vpack.c.bf16 %v623_v61, %v621_v56  ;;  %675 = vrot.lane.b32.xlu0 %v622_v60, %s1361_s0  ;;  %673 = vrot.lane.b32.xlu1 %v623_v61, %s1361_s0  ;;  %v1250_v1 = vpack.c.bf16 %v624_v62, %v622_v60 }
 0x602   :  { %627 = vrot.lane.b32.xlu0 %v621_v56, %s1362_s1  ;;  %677 = vrot.lane.b32.xlu1 %v624_v62, %s1361_s0 }
 0x606   :  { %631 = vrot.lane.b32.xlu0 %v622_v60, %s1362_s1  ;;  %629 = vrot.lane.b32.xlu1 %v623_v61, %s1362_s1 }
 0x60a   :  { %633 = vrot.lane.b32.xlu1 %v624_v62, %s1362_s1 }
 0x66c   :  { %v672_v4 = vpop.permute.xlu0 %671 }
 0x670   :  { %v674_v5 = vpop.permute.xlu1 %673  ;;  %v676_v8 = vpop.permute.xlu0 %675 }
 0x671   :  { %v679_v12 = vsel %vm203_vm4, %v672_v4, %v676_v8  ;;  %v681_v13 = vsel %vm203_vm4, %v676_v8, %v672_v4 }
 0x672   :  { %v683_v18 = vmul.f32 %v1410_v7, %v679_v12  ;;  %v684_v19 = vmul.f32 %v1414_v10, %v681_v13 }
 0x674   :  { %v678_v14 = vpop.permute.xlu1 %677  ;;  %v628_v15 = vpop.permute.xlu0 %627 }
 0x675   :  { %v680_v16 = vsel %vm203_vm4, %v674_v5, %v678_v14  ;;  %v682_v17 = vsel %vm203_vm4, %v678_v14, %v674_v5  ;;  %v1368_v5 = vmov 5  }
 0x676   :  { %v685_v20 = vmul.f32 %v1410_v7, %v680_v16  ;;  %v686_v11 = vmul.f32 %v1414_v10, %v682_v17  ;;  %1283 = vset.pattern.permute.xlu0 %v1368_v5 }
 0x678   :  { %v1251_v21 = vpack.c.bf16 %v685_v20, %v683_v18  ;;  %v630_v22 = vpop.permute.xlu1 %629  ;;  %v632_v23 = vpop.permute.xlu0 %631  ;;  %v1252_v24 = vpack.c.bf16 %v686_v11, %v684_v19 }
 0x679   :  { %v635_v25 = vsel %vm176_vm5, %v628_v15, %v632_v23  ;;  %v637_v26 = vsel %vm176_vm5, %v632_v23, %v628_v15 }
 0x67a   :  { %758 = vmatprep.subr.bf16.mxu0 %v1252_v24  ;;  %v639_v30 = vmul.f32 %v1408_v6, %v637_v26  ;;  %v640_v31 = vmul.f32 %v1412_v9, %v635_v25 }
 0x67b   :  { %759 = vmatpush1.bf16.msra.mxu0 %v1251_v21 }
 0x67c   :  { %v634_v27 = vpop.permute.xlu1 %633  ;;  %760 = vmatprep.subr.bf16.mxu0 %v1250_v1 }
 0x67d   :  { %v636_v28 = vsel %vm176_vm5, %v630_v22, %v634_v27  ;;  %v638_v29 = vsel %vm176_vm5, %v634_v27, %v630_v22 }
 0x67e   :  { %v641_v32 = vmul.f32 %v1408_v6, %v638_v29  ;;  %v642_v33 = vmul.f32 %v1412_v9, %v636_v28 }
 0x67f   :  { %761 = vmatpush1.bf16.msra.mxu0 %v1249_v0 }
 0x680   :  { %v1247_v34 = vpack.c.bf16 %v641_v32, %v639_v30  ;;  %v1248_v35 = vpack.c.bf16 %v642_v33, %v640_v31 }
 0x682   :  { %762 = vmatprep.subr.bf16.mxu0 %v1248_v35 }
 0x683   :  { %763 = vmatpush1.bf16.msra.mxu0 %v1247_v34 }
 0x686   :  { %1203 = vmatmul.mubr.msk.bf16.vlgmr.msra.gmra.mxu0 %vm260_vm6, %v1291_v36 }
 0x746   :  { %v782_v37 = vpop.f32.mrf.mxu0 }
 0x747   :  { %v799_v42 = vmul.f32 %v782_v37, %v782_v37 }
 0x748   :  { %v784_v38 = vpop.f32.mrf.mxu0 }
 0x749   :  { %v791_v39 = vadd.f32 %v784_v38, %v782_v37  ;;  %v800_v40 = vmul.f32 %v784_v38, %v784_v38 }
 0x74a   :  { %v786_v41 = vpop.f32.mrf.mxu0 }
 0x74b   :  { %792 = vadd.xlane.f32.xlu0 %v791_v39  ;;  %v803_v45 = vadd.f32 %v800_v40, %v799_v42  ;;  %v801_v47 = vmul.f32 %v786_v41, %v786_v41 }
 0x74c   :  { %v788_v43 = vpop.f32.mrf.mxu0 }
 0x74d   :  { %v802_v44 = vmul.f32 %v788_v43, %v788_v43  ;;  %v794_v46 = vadd.f32 %v788_v43, %v786_v41 }
 0x74f   :  { %804 = vadd.xlane.f32.xlu0 %v803_v45  ;;  %795 = vadd.xlane.f32.xlu1 %v794_v46  ;;  %v806_v48 = vadd.f32 %v802_v44, %v801_v47 }
 0x753   :  { %807 = vadd.xlane.f32.xlu0 %v806_v48 }
 0x7d4   :  { %v793_v50 = vpop.xlane.xlu0 %792 }
 0x7d5   :  { %v797_v51 = vmul.f32 0.00390625, %v793_v50 }
 0x7d7   :  { %v811_v54 = vmul.f32 %v797_v51, %v797_v51 }
 0x7d8   :  { %v805_v52 = vpop.xlane.xlu0 %804  ;;  %v796_v53 = vpop.xlane.xlu1 %795 }
 0x7d9   :  { %v809_v55 = vmul.f32 0.00390625, %v805_v52  ;;  %v798_v56 = vmul.f32 0.00390625, %v796_v53 }
 0x7db   :  { %v813_v57 = vsub.f32 %v809_v55, %v811_v54  ;;  %v812_v60 = vmul.f32 %v798_v56, %v798_v56 }
 0x7dc   :  { %v808_v58 = vpop.xlane.xlu0 %807 }
 0x7dd   :  { %v815_v59 = vmax.f32 %v813_v57, 0.0  ;;  %v810_v61 = vmul.f32 0.00390625, %v808_v58 }
 0x7df   :  { %v817_v62 = vadd.f32 1e-05, %v815_v59  ;;  %v814_v0 = vsub.f32 %v810_v61, %v812_v60 }
 0x7e1   :  { %1301 = vrsqrt.f32 %v817_v62  ;;  %v816_v1 = vmax.f32 %v814_v0, 0.0 }
 0x7e3   :  { %v818_v4 = vadd.f32 1e-05, %v816_v1  ;;  %v1292_v1 = vld [vmem:[#allocation5 + $0x18] sm:$0xff]  }
 0x7e5   :  { %1303 = vrsqrt.f32 %v818_v4 }
 0x7ee   :  { %v1302_v8 = vpop.eup %1301 }
 0x7ef   :  { %v821_v12 = vmul.f32 %v1302_v8, %v1448_v63 }
 0x7f1   :  { %v823_v13 = vmul.f32 %v821_v12, %v797_v51 }
 0x7f2   :  { %v1304_v14 = vpop.eup %1303 }
 0x7f3   :  { %827 = vrot.lane.b32.xlu1 %v823_v13, %s1362_s1  ;;  %v822_v15 = vmul.f32 %v1304_v14, %v1454_v2 }
 0x7f5   :  { %v824_v16 = vmul.f32 %v822_v15, %v798_v56 }
 0x7f7   :  { %837 = vperm.xlu1 %1282, %v821_v12   ;;  %829 = vrot.lane.b32.xlu0 %v824_v16, %s1362_s1 }
 0x7fb   :  { %842 = vperm.xlu1 %1282, %v822_v15  }
 0x7ff   :  { %1284 = vset.pattern.permute.xlu1 %v1368_v5 }
 0x865   :  { %v828_v17 = vpop.permute.xlu1 %827 }
 0x866   :  { %v833_v18 = vsub.f32 %v1448_v63, %v828_v17 }
 0x868   :  { %851 = vperm.xlu0 %1283, %v833_v18   ;;  %v1369_v18 = vmov 6  }
 0x869   :  { %v830_v19 = vpop.permute.xlu0 %829 }
 0x86a   :  { %v834_v20 = vsub.f32 %v1454_v2, %v830_v19 }
 0x86c   :  { %856 = vperm.xlu1 %1284, %v834_v20   ;;  %1286 = vset.pattern.permute.xlu0 %v1369_v18 }
 0x870   :  { %1285 = vset.pattern.permute.xlu1 %v1369_v18 }
 0x872   :  { %v838_v11 = vpop.permute.xlu1 %837 }
 0x873   :  { %v845_v21 = vmul.f32 %v838_v11, %v782_v37  ;;  %v846_v24 = vmul.f32 %v838_v11, %v784_v38 }
 0x876   :  { %v843_v22 = vpop.permute.xlu1 %842 }
 0x877   :  { %v847_v26 = vmul.f32 %v843_v22, %v786_v41  ;;  %v848_v27 = vmul.f32 %v843_v22, %v788_v43 }
 0x8e3   :  { %v852_v23 = vpop.permute.xlu0 %851 }
 0x8e4   :  { %v859_v25 = vadd.f32 %v852_v23, %v845_v21  ;;  %v860_v28 = vadd.f32 %v852_v23, %v846_v24 }
 0x8e6   :  { %v863_v29 = vmax.f32 %v859_v25, 0.0  ;;  %v864_v33 = vmax.f32 %v860_v28, 0.0 }
 0x8e7   :  { %v857_v30 = vpop.permute.xlu1 %856 }
 0x8e8   :  { %v861_v31 = vadd.f32 %v857_v30, %v847_v26  ;;  %v862_v32 = vadd.f32 %v857_v30, %v848_v27  ;;  %913 = vrot.lane.b32.xlu1 %v863_v29, %s1361_s0 }
 0x8ea   :  { %v865_v34 = vmax.f32 %v861_v31, 0.0  ;;  %v866_v35 = vmax.f32 %v862_v32, 0.0 }
 0x8ec   :  { %v1255_v36 = vpack.c.bf16 %v865_v34, %v863_v29  ;;  %917 = vrot.lane.b32.xlu1 %v864_v33, %s1361_s0  ;;  %915 = vrot.lane.b32.xlu0 %v865_v34, %s1361_s0  ;;  %v1256_v37 = vpack.c.bf16 %v866_v35, %v864_v33 }
 0x8f0   :  { %869 = vrot.lane.b32.xlu1 %v863_v29, %s1362_s1  ;;  %919 = vrot.lane.b32.xlu0 %v866_v35, %s1361_s0 }
 0x8f4   :  { %873 = vrot.lane.b32.xlu1 %v864_v33, %s1362_s1  ;;  %871 = vrot.lane.b32.xlu0 %v865_v34, %s1362_s1 }
 0x8f8   :  { %875 = vrot.lane.b32.xlu0 %v866_v35, %s1362_s1 }
 0x95a   :  { %v914_v38 = vpop.permute.xlu1 %913 }
 0x95e   :  { %v916_v39 = vpop.permute.xlu0 %915  ;;  %v918_v40 = vpop.permute.xlu1 %917 }
 0x95f   :  { %v921_v41 = vsel %vm203_vm4, %v914_v38, %v918_v40  ;;  %v923_v42 = vsel %vm203_vm4, %v918_v40, %v914_v38  ;;  %v1370_v40 = vmov 7  }
 0x960   :  { %v925_v47 = vmul.f32 %v1410_v7, %v921_v41  ;;  %v926_v48 = vmul.f32 %v1414_v10, %v923_v42 }
 0x962   :  { %v920_v43 = vpop.permute.xlu0 %919  ;;  %v870_v44 = vpop.permute.xlu1 %869 }
 0x963   :  { %v922_v45 = vsel %vm203_vm4, %v916_v39, %v920_v43  ;;  %v924_v46 = vsel %vm203_vm4, %v920_v43, %v916_v39 }
 0x964   :  { %v927_v49 = vmul.f32 %v1410_v7, %v922_v45  ;;  %v928_v50 = vmul.f32 %v1414_v10, %v924_v46 }
 0x966   :  { %v1257_v51 = vpack.c.bf16 %v927_v49, %v925_v47  ;;  %v872_v52 = vpop.permute.xlu0 %871  ;;  %v874_v53 = vpop.permute.xlu1 %873  ;;  %v1258_v54 = vpack.c.bf16 %v928_v50, %v926_v48 }
 0x967   :  { %v877_v55 = vsel %vm176_vm5, %v870_v44, %v874_v53  ;;  %v879_v56 = vsel %vm176_vm5, %v874_v53, %v870_v44 }
 0x968   :  { %1000 = vmatprep.subr.bf16.mxu1 %v1258_v54  ;;  %v881_v10 = vmul.f32 %v1408_v6, %v879_v56  ;;  %v882_v59 = vmul.f32 %v1412_v9, %v877_v55 }
 0x969   :  { %1001 = vmatpush1.bf16.msra.mxu1 %v1257_v51 }
 0x96a   :  { %v876_v57 = vpop.permute.xlu0 %875  ;;  %1002 = vmatprep.subr.bf16.mxu1 %v1256_v37 }
 0x96b   :  { %v878_v58 = vsel %vm176_vm5, %v872_v52, %v876_v57  ;;  %v880_v7 = vsel %vm176_vm5, %v876_v57, %v872_v52 }
 0x96c   :  { %v883_v60 = vmul.f32 %v1408_v6, %v880_v7  ;;  %v884_v61 = vmul.f32 %v1412_v9, %v878_v58 }
 0x96d   :  { %1003 = vmatpush1.bf16.msra.mxu1 %v1255_v36 }
 0x96e   :  { %v1253_v62 = vpack.c.bf16 %v883_v60, %v881_v10  ;;  %v1254_v0 = vpack.c.bf16 %v884_v61, %v882_v59 }
 0x970   :  { %1004 = vmatprep.subr.bf16.mxu1 %v1254_v0 }
 0x971   :  { %1005 = vmatpush1.bf16.msra.mxu1 %v1253_v62 }
 0x974   :  { %1217 = vmatmul.mubr.msk.bf16.vlgmr.msra.gmra.mxu1 %vm260_vm6, %v1292_v1 }
 0xa34   :  { %v1024_v4 = vpop.f32.mrf.mxu1 }
 0xa35   :  { %v1041_v16 = vmul.f32 %v1024_v4, %v1024_v4 }
 0xa36   :  { %v1026_v5 = vpop.f32.mrf.mxu1 }
 0xa37   :  { %v1033_v3 = vadd.f32 %v1026_v5, %v1024_v4  ;;  %v1042_v6 = vmul.f32 %v1026_v5, %v1026_v5 }
 0xa38   :  { %v1028_v8 = vpop.f32.mrf.mxu1 }
 0xa39   :  { %1034 = vadd.xlane.f32.xlu1 %v1033_v3  ;;  %v1043_v15 = vmul.f32 %v1028_v8, %v1028_v8  ;;  %v1045_v17 = vadd.f32 %v1042_v6, %v1041_v16 }
 0xa3a   :  { %v1030_v12 = vpop.f32.mrf.mxu1 }
 0xa3b   :  { %v1044_v13 = vmul.f32 %v1030_v12, %v1030_v12  ;;  %v1036_v14 = vadd.f32 %v1030_v12, %v1028_v8 }
 0xa3d   :  { %1037 = vadd.xlane.f32.xlu0 %v1036_v14  ;;  %v1048_v9 = vadd.f32 %v1044_v13, %v1043_v15 }
 0xa3f   :  { %1049 = vadd.xlane.f32.xlu1 %v1048_v9 }
 0xa41   :  { %1046 = vadd.xlane.f32.xlu0 %v1045_v17 }
 0xac2   :  { %v1035_v19 = vpop.xlane.xlu1 %1034 }
 0xac3   :  { %v1039_v11 = vmul.f32 0.00390625, %v1035_v19 }
 0xac5   :  { %v1053_v26 = vmul.f32 %v1039_v11, %v1039_v11 }
 0xac6   :  { %v1038_v20 = vpop.xlane.xlu0 %1037 }
 0xac7   :  { %v1040_v21 = vmul.f32 0.00390625, %v1038_v20 }
 0xac8   :  { %v1050_v22 = vpop.xlane.xlu1 %1049 }
 0xac9   :  { %v1054_v23 = vmul.f32 %v1040_v21, %v1040_v21  ;;  %v1052_v24 = vmul.f32 0.00390625, %v1050_v22 }
 0xaca   :  { %v1047_v25 = vpop.xlane.xlu0 %1046 }
 0xacb   :  { %v1056_v27 = vsub.f32 %v1052_v24, %v1054_v23  ;;  %v1051_v28 = vmul.f32 0.00390625, %v1047_v25 }
 0xacd   :  { %v1058_v29 = vmax.f32 %v1056_v27, 0.0  ;;  %v1055_v30 = vsub.f32 %v1051_v28, %v1053_v26 }
 0xacf   :  { %v1060_v31 = vadd.f32 1e-05, %v1058_v29  ;;  %v1057_v32 = vmax.f32 %v1055_v30, 0.0 }
 0xad1   :  { %1305 = vrsqrt.f32 %v1060_v31  ;;  %v1059_v33 = vadd.f32 1e-05, %v1057_v32 }
 0xad3   :  { %1307 = vrsqrt.f32 %v1059_v33 }
 0xade   :  { %v1306_v34 = vpop.eup %1305 }
 0xadf   :  { %v1064_v35 = vmul.f32 %v1306_v34, %v1454_v2 }
 0xae0   :  { %v1308_v36 = vpop.eup %1307 }
 0xae1   :  { %v1066_v37 = vmul.f32 %v1064_v35, %v1040_v21  ;;  %v1063_v38 = vmul.f32 %v1308_v36, %v1448_v63 }
 0xae3   :  { %1071 = vrot.lane.b32.xlu1 %v1066_v37, %s1362_s1  ;;  %v1065_v39 = vmul.f32 %v1063_v38, %v1039_v11 }
 0xae5   :  { %1069 = vrot.lane.b32.xlu0 %v1065_v39, %s1362_s1 }
 0xae7   :  { %1079 = vperm.xlu1 %1285, %v1063_v38  }
 0xae9   :  { %1084 = vperm.xlu0 %1286, %v1064_v35  }
 0xaeb   :  { %1287 = vset.pattern.permute.xlu1 %v1370_v40 }
 0xaed   :  { %1288 = vset.pattern.permute.xlu0 %v1370_v40 }
 0xb55   :  { %v1072_v43 = vpop.permute.xlu1 %1071 }
 0xb56   :  { %v1076_v44 = vsub.f32 %v1454_v2, %v1072_v43 }
 0xb57   :  { %v1070_v41 = vpop.permute.xlu0 %1069 }
 0xb58   :  { %v1075_v42 = vsub.f32 %v1448_v63, %v1070_v41 }
 0xb5a   :  { %1093 = vperm.xlu1 %1287, %v1075_v42  }
 0xb5e   :  { %1098 = vperm.xlu1 %1287, %v1076_v44  }
 0xb62   :  { %v1080_v45 = vpop.permute.xlu1 %1079 }
 0xb63   :  { %v1087_v46 = vmul.f32 %v1080_v45, %v1024_v4  ;;  %v1088_v47 = vmul.f32 %v1080_v45, %v1026_v5 }
 0xb64   :  { %v1085_v48 = vpop.permute.xlu0 %1084 }
 0xb65   :  { %v1089_v52 = vmul.f32 %v1085_v48, %v1028_v8  ;;  %v1090_v53 = vmul.f32 %v1085_v48, %v1030_v12 }
 0xbd5   :  { %v1094_v49 = vpop.permute.xlu1 %1093 }
 0xbd6   :  { %v1101_v50 = vadd.f32 %v1094_v49, %v1087_v46  ;;  %v1102_v51 = vadd.f32 %v1094_v49, %v1088_v47 }
 0xbd8   :  { %v1105_v54 = vmax.f32 %v1101_v50, 0.0  ;;  %v1106_v55 = vmax.f32 %v1102_v51, 0.0 }
 0xbd9   :  { %v1099_v56 = vpop.permute.xlu1 %1098 }
 0xbda   :  { %1109 = vst [vmem:[#allocation8] sm:$0xff] %v1105_v54  ;;  %1110 = vst [vmem:[#allocation8 + $0x8] sm:$0xff] %v1106_v55  ;;  %v1103_v63 = vadd.f32 %v1099_v56, %v1089_v52  ;;  %v1104_v57 = vadd.f32 %v1099_v56, %v1090_v53 }
 0xbdc   :  { %v1107_v2 = vmax.f32 %v1103_v63, 0.0  ;;  %v1108_v58 = vmax.f32 %v1104_v57, 0.0 }
 0xbde   :  { %1111 = vst [vmem:[#allocation8 + $0x10] sm:$0xff] %v1107_v2  ;;  %1112 = vst [vmem:[#allocation8 + $0x18] sm:$0xff] %v1108_v58 }
 0xbdf   :  { %1340 = shalt.err (!%p1337_p9)
}
 0xbe0   :  { %s1372_s29 = smov 256   ;;  %s1373_s30 = smov 16  }
 0xbe1   :  { %1124 = dma.vmem_to_hbm [thread:$0]  %s1119_s27, 512, %s1585_s3, [#allocation7], %s1372_s29, %s1372_s29, %s1373_s30  }
 0xbe2   :  { %1355 = dma.done.wait [#allocation7], 512  }
 0xbe3   :  { %1356 = vsyncadd [#allocation7], 4294966784 }
 0xbe4   :  { %1128 = vsyncpa [#allocation6], 1 }
 0xbe5   :  { %1129 = vsyncpa [#allocation7], 1 }
 0xbe6   :  { %1130 = vsyncmov [#allocation4] }
 0xbe9   :  { %s1131_s6 = vpop.sfrf %1130 }
 0xbea   :  { %p1218_p10 = scmp.ne.s32.totalorder %s1131_s6, 0 }
 0xbec   :  { %1135 = shalt.err (%p1218_p10)  }
 0xbed   :  { %1137 = vsyncmov [#allocation4 + $0x1] }
 0xbf0   :  { %s1138_s7 = vpop.sfrf %1137 }
 0xbf1   :  { %p1219_p11 = scmp.ne.s32.totalorder %s1138_s7, 0 }
 0xbf3   :  { %1142 = shalt.err (%p1219_p11)  }

</bundles_post_ra>
